<compile_context>
chip_gen: v5e
topology: v5e:2x2
jax: 0.10.0
libtpu: 0.0.40
codegen_flags: <defaults>
</compile_context>

<pallas_src>
import functools

import jax
import jax.numpy as jnp
from jax.experimental import pallas as pl
from jax.experimental.pallas import tpu as pltpu

EPS = 1e-5


def _lane_group_sum(row, group):
    """row: (1, WC) with lane layout l = w*group + c. Returns (1, WC) where every
    lane holds the total over all w for its channel c (per-channel sum, already
    broadcast back to the lane layout). Requires WC // group to be a power of two.
    Uses cyclic pltpu.roll doubling (XLU slot) — no lane->sublane reshape."""
    wc = row.shape[1]
    shift = group
    while shift < wc:
        row = row + pltpu.roll(row, shift, 1)
        shift *= 2
    return row


def _bn_fold(acc, gamma_lane, beta_lane, group, inv_n):
    """Training-mode BatchNorm folded into a per-lane FMA: y = acc*scale + shift.
    acc: (NH, WC) f32 conv output, lane period `group`. Centered (two-pass)
    variance; biased 1/N normalisation like PyTorch."""
    mean = _lane_group_sum(jnp.sum(acc, axis=0, keepdims=True), group) * inv_n
    d = acc - mean
    var = _lane_group_sum(jnp.sum(d * d, axis=0, keepdims=True), group) * inv_n
    scale = gamma_lane * jax.lax.rsqrt(var + EPS)
    shift = beta_lane - mean * scale
    return scale, shift


def resnet_block_kernel(x_ref, b1_ref, g1_ref, be1_ref, b2_ref, g2_ref, be2_ref,
                        out_ref, xpad, ypad, *, c_mid, c_out):
    # x_ref : (N, H, W*Cin)        f32 lane-dense input rows
    # b1_ref: (3, W*Cin, W*Cout)   bf16 Toeplitz conv1 weights (one block per ky)
    # b2_ref: (3, W*Cout, W*Cexp)  bf16 Toeplitz conv2 weights
    # g*/be*: (1, W*C)             f32 BN gamma/beta pre-tiled to the lane layout
    # out_ref: (N*H, W*Cexp)       f32 lane-dense output
    # xpad/ypad: (N, H+2, W*C)     bf16 scratch, row padding for conv1/conv2
    N, H, wc_in = x_ref.shape
    wc_mid = ypad.shape[2]
    wc_out = out_ref.shape[1]
    nh = N * H
    width = wc_out // c_out
    inv_n = 1.0 / float(nh * width)

    x = x_ref[...]                                   # f32, kept for the residual

    # ---- conv1: pad rows (ky) in a tiny bf16 scratch; kx shift and W-direction
    # zero padding live inside the Toeplitz weights.
    zrow1 = jnp.zeros((N, 1, wc_in), jnp.bfloat16)
    xpad[:, 0:1, :] = zrow1
    xpad[:, H + 1:H + 2, :] = zrow1
    xpad[:, 1:H + 1, :] = x.astype(jnp.bfloat16)

    a1 = None
    for ky in range(3):
        s = xpad[:, ky:ky + H, :].reshape(nh, wc_in)
        t = jnp.dot(s, b1_ref[ky], preferred_element_type=jnp.float32)
        a1 = t if a1 is None else a1 + t
    # (conv bias omitted: exactly cancelled by the training-mode BN mean subtraction)

    # ---- bn1 + relu: single FMA + max in the lane-dense layout
    sc1, sh1 = _bn_fold(a1, g1_ref[...], be1_ref[...], c_mid, inv_n)
    y = jnp.maximum(a1 * sc1 + sh1, 0.0)

    # ---- conv2 (same scheme)
    zrow2 = jnp.zeros((N, 1, wc_mid), jnp.bfloat16)
    ypad[:, 0:1, :] = zrow2
    ypad[:, H + 1:H + 2, :] = zrow2
    ypad[:, 1:H + 1, :] = y.reshape(N, H, wc_mid).astype(jnp.bfloat16)

    a2 = None
    for ky in range(3):
        s = ypad[:, ky:ky + H, :].reshape(nh, wc_mid)
        t = jnp.dot(s, b2_ref[ky], preferred_element_type=jnp.float32)
        a2 = t if a2 is None else a2 + t

    # ---- bn2 + relu, residual add, final relu (module applies relu twice — match it)
    sc2, sh2 = _bn_fold(a2, g2_ref[...], be2_ref[...], c_out, inv_n)
    z = jnp.maximum(a2 * sc2 + sh2, 0.0)
    out_ref[...] = jnp.maximum(z + x.reshape(nh, wc_in), 0.0)   # one dense store


def _toeplitz_weights(w, W):
    """PyTorch conv weight (Cout, Cin, 3, 3) -> (3, W*Cin, W*Cout) bf16 block-
    tridiagonal matrices: B[ky, wi*Cin+ci, wo*Cout+co] = w[co, ci, ky, wi-wo+1]
    when |wi - wo| <= 1, else 0 (bakes the kx shift + W-padding into the GEMM)."""
    cout, cin = w.shape[0], w.shape[1]
    wt = jnp.transpose(w, (2, 3, 1, 0)).astype(jnp.float32)      # (ky, kx, Cin, Cout)
    wi = jnp.arange(W)[:, None]
    wo = jnp.arange(W)[None, :]
    sel = jnp.stack([(wi == wo + kx - 1) for kx in range(3)], 0).astype(jnp.float32)
    b = jnp.einsum('xio,yxcd->yicod', sel, wt)                   # (ky, W, Cin, W, Cout)
    return b.reshape(3, W * cin, W * cout).astype(jnp.bfloat16)


def _lane_tile(v, W):
    # Per-channel vector (C,) -> (1, W*C) with lane index w*C + c.
    return jnp.tile(v.astype(jnp.float32), W).reshape(1, W * v.shape[0])


def resnet_block(x_nchw, params, stride=1):
    """Forward pass of `block` (identity_downsample=None, training-mode BatchNorm);
    expansion folded into conv2's output channels. x_nchw: (N, Cin, H, W) f32 NCHW."""
    assert stride == 1  # TODO(synk): stride>1 / identity_downsample path not implemented (module defaults)
    w1, b1, g1, be1, w2, b2, g2, be2 = params
    del b1, b2   # conv bias before training-mode BatchNorm is mean-cancelled (no-op)
    N, Cin, H, W = x_nchw.shape
    Cout = w1.shape[0]
    Cexp = w2.shape[0]
    assert Cexp == Cin, "residual add requires in_channels == out_channels*expansion"
    assert W & (W - 1) == 0, "W must be a power of two for the lane-group reduction"
    # Best performance when W*C is a multiple of 128 (exactly 128 at the demo shape).

    # Lane-dense layout: each image row h is one (W*C,) vector, lane index = w*C + c.
    x_rows = jnp.transpose(x_nchw, (0, 2, 3, 1)).reshape(N, H, W * Cin).astype(jnp.float32)

    b1k = _toeplitz_weights(w1, W)               # (3, W*Cin,  W*Cout)
    b2k = _toeplitz_weights(w2, W)               # (3, W*Cout, W*Cexp)
    g1l, be1l = _lane_tile(g1, W), _lane_tile(be1, W)
    g2l, be2l = _lane_tile(g2, W), _lane_tile(be2, W)

    vmem = pl.BlockSpec(memory_space=pltpu.MemorySpace.VMEM)
    kernel = functools.partial(resnet_block_kernel, c_mid=Cout, c_out=Cexp)

    out_flat = pl.pallas_call(
        kernel,
        out_shape=jax.ShapeDtypeStruct((N * H, W * Cexp), jnp.float32),
        in_specs=[vmem] * 7,
        out_specs=vmem,
        scratch_shapes=[
            pltpu.VMEM((N, H + 2, W * Cin), jnp.bfloat16),    # row-padded input
            pltpu.VMEM((N, H + 2, W * Cout), jnp.bfloat16),   # row-padded conv1 output
        ],
    )(x_rows, b1k, g1l, be1l, b2k, g2l, be2l)

    out_nhwc = out_flat.reshape(N, H, W, Cexp)      # free (contiguous) reshape
    return jnp.transpose(out_nhwc, (0, 3, 1, 2))    # back to NCHW for PyTorch parity


def init_params(key, in_channels, out_channels, expansion=1):
    exp_out = out_channels * expansion
    k1, k2, k3, k4 = jax.random.split(key, 4)
    w1 = 0.1 * jax.random.normal(k1, (out_channels, in_channels, 3, 3), jnp.float32)
    b1 = 0.01 * jax.random.normal(k2, (out_channels,), jnp.float32)
    w2 = 0.1 * jax.random.normal(k3, (exp_out, out_channels, 3, 3), jnp.float32)
    b2 = 0.01 * jax.random.normal(k4, (exp_out,), jnp.float32)
    # BatchNorm affine params (PyTorch default init: gamma=1, beta=0)
    g1 = jnp.ones((out_channels,), jnp.float32)
    be1 = jnp.zeros((out_channels,), jnp.float32)
    g2 = jnp.ones((exp_out,), jnp.float32)
    be2 = jnp.zeros((exp_out,), jnp.float32)
    return (w1, b1, g1, be1, w2, b2, g2, be2)


if __name__ == "__main__":
    key = jax.random.PRNGKey(0)
    kx, kp = jax.random.split(key)

    # in_channels = out_channels*expansion = 8 so the identity add is valid, and
    # W * C = 16 * 8 = 128 so every activation row is exactly one 128-lane vector.
    N, C, H, W = 2, 8, 16, 16
    x = jax.random.normal(kx, (N, C, H, W), jnp.float32)   # NCHW, like PyTorch
    params = init_params(kp, in_channels=C, out_channels=C, expansion=1)

    out = resnet_block(x, params, stride=1)
    out = jax.block_until_ready(out)

    assert out.shape == (N, C, H, W)
    assert bool(jnp.all(out >= 0.0))   # final relu
    print("KERNEL_OK")
</pallas_src>

<mosaic_0001>
module attributes {stable_mosaic.version = 11 : i64} {
  func.func @resnet_block_kernel(%arg0: memref<2x16x128xf32, #tpu.memory_space<vmem>>, %arg1: memref<3x128x128xbf16, #tpu.memory_space<vmem>>, %arg2: memref<1x128xf32, #tpu.memory_space<vmem>>, %arg3: memref<1x128xf32, #tpu.memory_space<vmem>>, %arg4: memref<3x128x128xbf16, #tpu.memory_space<vmem>>, %arg5: memref<1x128xf32, #tpu.memory_space<vmem>>, %arg6: memref<1x128xf32, #tpu.memory_space<vmem>>, %arg7: memref<32x128xf32, #tpu.memory_space<vmem>>, %arg8: memref<2x18x128xbf16, #tpu.memory_space<vmem>>, %arg9: memref<2x18x128xbf16, #tpu.memory_space<vmem>>) attributes {dimension_semantics = [], scalar_prefetch = 0 : i64, scratch_operands = 2 : i64, tpu.core_type = #tpu.core_type<tc>} {
    %c0 = arith.constant 0 : index
    %c0_0 = arith.constant 0 : index
    %c0_1 = arith.constant 0 : index
    %0 = vector.load %arg0[%c0, %c0_0, %c0_1] : memref<2x16x128xf32, #tpu.memory_space<vmem>>, vector<2x16x128xf32>
    %cst = arith.constant 0.000000e+00 : bf16
    %1 = vector.broadcast %cst : bf16 to vector<2x1x128xbf16>
    %c0_2 = arith.constant 0 : index
    %c0_3 = arith.constant 0 : index
    %c0_4 = arith.constant 0 : index
    %2 = vector.load %arg8[%c0_2, %c0_3, %c0_4] : memref<2x18x128xbf16, #tpu.memory_space<vmem>>, vector<2x1x128xbf16>
    tpu.vector_store %arg8[%c0_2, %c0_3, %c0_4], %1 {strides = array<i32>} : memref<2x18x128xbf16, #tpu.memory_space<vmem>>, vector<2x1x128xbf16>,
    %c0_5 = arith.constant 0 : index
    %c17 = arith.constant 17 : index
    %c0_6 = arith.constant 0 : index
    %3 = vector.load %arg8[%c0_5, %c17, %c0_6] : memref<2x18x128xbf16, #tpu.memory_space<vmem>>, vector<2x1x128xbf16>
    tpu.vector_store %arg8[%c0_5, %c17, %c0_6], %1 {strides = array<i32>} : memref<2x18x128xbf16, #tpu.memory_space<vmem>>, vector<2x1x128xbf16>,
    %4 = arith.truncf %0 : vector<2x16x128xf32> to vector<2x16x128xbf16>
    %c0_7 = arith.constant 0 : index
    %c1 = arith.constant 1 : index
    %c0_8 = arith.constant 0 : index
    %5 = vector.load %arg8[%c0_7, %c1, %c0_8] : memref<2x18x128xbf16, #tpu.memory_space<vmem>>, vector<2x16x128xbf16>
    tpu.vector_store %arg8[%c0_7, %c1, %c0_8], %4 {strides = array<i32>} : memref<2x18x128xbf16, #tpu.memory_space<vmem>>, vector<2x16x128xbf16>,
    %c0_9 = arith.constant 0 : index
    %c0_10 = arith.constant 0 : index
    %c0_11 = arith.constant 0 : index
    %6 = vector.load %arg8[%c0_9, %c0_10, %c0_11] : memref<2x18x128xbf16, #tpu.memory_space<vmem>>, vector<2x16x128xbf16>
    %7 = vector.shape_cast %6 : vector<2x16x128xbf16> to vector<32x128xbf16>
    %c0_12 = arith.constant 0 : index
    %c0_13 = arith.constant 0 : index
    %c0_14 = arith.constant 0 : index
    %8 = vector.load %arg1[%c0_12, %c0_13, %c0_14] : memref<3x128x128xbf16, #tpu.memory_space<vmem>>, vector<1x128x128xbf16>
    %9 = vector.shape_cast %8 : vector<1x128x128xbf16> to vector<128x128xbf16>
    %cst_15 = arith.constant dense<0.000000e+00> : vector<32x128xf32>
    %10 = tpu.matmul %7, %9, %cst_15 {dimension_numbers = #tpu.dot_dimension_numbers<[1], [0], [0], [1], [0, 0, 1, 1], [], []>} : vector<32x128xbf16>, vector<128x128xbf16>, vector<32x128xf32> -> vector<32x128xf32>
    %c0_16 = arith.constant 0 : index
    %c1_17 = arith.constant 1 : index
    %c0_18 = arith.constant 0 : index
    %11 = vector.load %arg8[%c0_16, %c1_17, %c0_18] : memref<2x18x128xbf16, #tpu.memory_space<vmem>>, vector<2x16x128xbf16>
    %12 = vector.shape_cast %11 : vector<2x16x128xbf16> to vector<32x128xbf16>
    %c1_19 = arith.constant 1 : index
    %c0_20 = arith.constant 0 : index
    %c0_21 = arith.constant 0 : index
    %13 = vector.load %arg1[%c1_19, %c0_20, %c0_21] : memref<3x128x128xbf16, #tpu.memory_space<vmem>>, vector<1x128x128xbf16>
    %14 = vector.shape_cast %13 : vector<1x128x128xbf16> to vector<128x128xbf16>
    %cst_22 = arith.constant dense<0.000000e+00> : vector<32x128xf32>
    %15 = tpu.matmul %12, %14, %cst_22 {dimension_numbers = #tpu.dot_dimension_numbers<[1], [0], [0], [1], [0, 0, 1, 1], [], []>} : vector<32x128xbf16>, vector<128x128xbf16>, vector<32x128xf32> -> vector<32x128xf32>
    %16 = arith.addf %10, %15 : vector<32x128xf32>
    %c0_23 = arith.constant 0 : index
    %c2 = arith.constant 2 : index
    %c0_24 = arith.constant 0 : index
    %17 = vector.load %arg8[%c0_23, %c2, %c0_24] : memref<2x18x128xbf16, #tpu.memory_space<vmem>>, vector<2x16x128xbf16>
    %18 = vector.shape_cast %17 : vector<2x16x128xbf16> to vector<32x128xbf16>
    %c2_25 = arith.constant 2 : index
    %c0_26 = arith.constant 0 : index
    %c0_27 = arith.constant 0 : index
    %19 = vector.load %arg1[%c2_25, %c0_26, %c0_27] : memref<3x128x128xbf16, #tpu.memory_space<vmem>>, vector<1x128x128xbf16>
    %20 = vector.shape_cast %19 : vector<1x128x128xbf16> to vector<128x128xbf16>
    %cst_28 = arith.constant dense<0.000000e+00> : vector<32x128xf32>
    %21 = tpu.matmul %18, %20, %cst_28 {dimension_numbers = #tpu.dot_dimension_numbers<[1], [0], [0], [1], [0, 0, 1, 1], [], []>} : vector<32x128xbf16>, vector<128x128xbf16>, vector<32x128xf32> -> vector<32x128xf32>
    %22 = arith.addf %16, %21 : vector<32x128xf32>
    %c0_29 = arith.constant 0 : index
    %c0_30 = arith.constant 0 : index
    %23 = vector.load %arg2[%c0_29, %c0_30] : memref<1x128xf32, #tpu.memory_space<vmem>>, vector<1x128xf32>
    %c0_31 = arith.constant 0 : index
    %c0_32 = arith.constant 0 : index
    %24 = vector.load %arg3[%c0_31, %c0_32] : memref<1x128xf32, #tpu.memory_space<vmem>>, vector<1x128xf32>
    %cst_33 = arith.constant dense<0.000000e+00> : vector<128xf32>
    %25 = vector.multi_reduction <add>, %22, %cst_33 [0] : vector<32x128xf32> to vector<128xf32>
    %26 = vector.shape_cast %25 : vector<128xf32> to vector<1x128xf32>
    %c8_i32 = arith.constant 8 : i32
    %27 = tpu.dynamic_rotate %26 by %c8_i32 dim 1 : vector<1x128xf32>, i32 -> vector<1x128xf32>
    %28 = arith.addf %26, %27 : vector<1x128xf32>
    %c16_i32 = arith.constant 16 : i32
    %29 = tpu.dynamic_rotate %28 by %c16_i32 dim 1 : vector<1x128xf32>, i32 -> vector<1x128xf32>
    %30 = arith.addf %28, %29 : vector<1x128xf32>
    %c32_i32 = arith.constant 32 : i32
    %31 = tpu.dynamic_rotate %30 by %c32_i32 dim 1 : vector<1x128xf32>, i32 -> vector<1x128xf32>
    %32 = arith.addf %30, %31 : vector<1x128xf32>
    %c64_i32 = arith.constant 64 : i32
    %33 = tpu.dynamic_rotate %32 by %c64_i32 dim 1 : vector<1x128xf32>, i32 -> vector<1x128xf32>
    %34 = arith.addf %32, %33 : vector<1x128xf32>
    %cst_34 = arith.constant 0.001953125 : f32
    %35 = vector.broadcast %cst_34 : f32 to vector<1x128xf32>
    %36 = arith.mulf %34, %35 : vector<1x128xf32>
    %37 = vector.broadcast %36 : vector<1x128xf32> to vector<32x128xf32>
    %38 = arith.subf %22, %37 : vector<32x128xf32>
    %39 = arith.mulf %38, %38 : vector<32x128xf32>
    %cst_35 = arith.constant dense<0.000000e+00> : vector<128xf32>
    %40 = vector.multi_reduction <add>, %39, %cst_35 [0] : vector<32x128xf32> to vector<128xf32>
    %41 = vector.shape_cast %40 : vector<128xf32> to vector<1x128xf32>
    %c8_i32_36 = arith.constant 8 : i32
    %42 = tpu.dynamic_rotate %41 by %c8_i32_36 dim 1 : vector<1x128xf32>, i32 -> vector<1x128xf32>
    %43 = arith.addf %41, %42 : vector<1x128xf32>
    %c16_i32_37 = arith.constant 16 : i32
    %44 = tpu.dynamic_rotate %43 by %c16_i32_37 dim 1 : vector<1x128xf32>, i32 -> vector<1x128xf32>
    %45 = arith.addf %43, %44 : vector<1x128xf32>
    %c32_i32_38 = arith.constant 32 : i32
    %46 = tpu.dynamic_rotate %45 by %c32_i32_38 dim 1 : vector<1x128xf32>, i32 -> vector<1x128xf32>
    %47 = arith.addf %45, %46 : vector<1x128xf32>
    %c64_i32_39 = arith.constant 64 : i32
    %48 = tpu.dynamic_rotate %47 by %c64_i32_39 dim 1 : vector<1x128xf32>, i32 -> vector<1x128xf32>
    %49 = arith.addf %47, %48 : vector<1x128xf32>
    %cst_40 = arith.constant 0.001953125 : f32
    %50 = vector.broadcast %cst_40 : f32 to vector<1x128xf32>
    %51 = arith.mulf %49, %50 : vector<1x128xf32>
    %cst_41 = arith.constant 9.99999974E-6 : f32
    %52 = vector.broadcast %cst_41 : f32 to vector<1x128xf32>
    %53 = arith.addf %51, %52 : vector<1x128xf32>
    %54 = math.rsqrt %53 : vector<1x128xf32>
    %55 = arith.mulf %23, %54 : vector<1x128xf32>
    %56 = arith.mulf %36, %55 : vector<1x128xf32>
    %57 = arith.subf %24, %56 : vector<1x128xf32>
    %58 = vector.broadcast %55 : vector<1x128xf32> to vector<32x128xf32>
    %59 = arith.mulf %22, %58 : vector<32x128xf32>
    %60 = vector.broadcast %57 : vector<1x128xf32> to vector<32x128xf32>
    %61 = arith.addf %59, %60 : vector<32x128xf32>
    %cst_42 = arith.constant 0.000000e+00 : f32
    %62 = vector.broadcast %cst_42 : f32 to vector<32x128xf32>
    %63 = arith.maximumf %61, %62 : vector<32x128xf32>
    %cst_43 = arith.constant 0.000000e+00 : bf16
    %64 = vector.broadcast %cst_43 : bf16 to vector<2x1x128xbf16>
    %c0_44 = arith.constant 0 : index
    %c0_45 = arith.constant 0 : index
    %c0_46 = arith.constant 0 : index
    %65 = vector.load %arg9[%c0_44, %c0_45, %c0_46] : memref<2x18x128xbf16, #tpu.memory_space<vmem>>, vector<2x1x128xbf16>
    tpu.vector_store %arg9[%c0_44, %c0_45, %c0_46], %64 {strides = array<i32>} : memref<2x18x128xbf16, #tpu.memory_space<vmem>>, vector<2x1x128xbf16>,
    %c0_47 = arith.constant 0 : index
    %c17_48 = arith.constant 17 : index
    %c0_49 = arith.constant 0 : index
    %66 = vector.load %arg9[%c0_47, %c17_48, %c0_49] : memref<2x18x128xbf16, #tpu.memory_space<vmem>>, vector<2x1x128xbf16>
    tpu.vector_store %arg9[%c0_47, %c17_48, %c0_49], %64 {strides = array<i32>} : memref<2x18x128xbf16, #tpu.memory_space<vmem>>, vector<2x1x128xbf16>,
    %67 = vector.shape_cast %63 : vector<32x128xf32> to vector<2x16x128xf32>
    %68 = arith.truncf %67 : vector<2x16x128xf32> to vector<2x16x128xbf16>
    %c0_50 = arith.constant 0 : index
    %c1_51 = arith.constant 1 : index
    %c0_52 = arith.constant 0 : index
    %69 = vector.load %arg9[%c0_50, %c1_51, %c0_52] : memref<2x18x128xbf16, #tpu.memory_space<vmem>>, vector<2x16x128xbf16>
    tpu.vector_store %arg9[%c0_50, %c1_51, %c0_52], %68 {strides = array<i32>} : memref<2x18x128xbf16, #tpu.memory_space<vmem>>, vector<2x16x128xbf16>,
    %c0_53 = arith.constant 0 : index
    %c0_54 = arith.constant 0 : index
    %c0_55 = arith.constant 0 : index
    %70 = vector.load %arg9[%c0_53, %c0_54, %c0_55] : memref<2x18x128xbf16, #tpu.memory_space<vmem>>, vector<2x16x128xbf16>
    %71 = vector.shape_cast %70 : vector<2x16x128xbf16> to vector<32x128xbf16>
    %c0_56 = arith.constant 0 : index
    %c0_57 = arith.constant 0 : index
    %c0_58 = arith.constant 0 : index
    %72 = vector.load %arg4[%c0_56, %c0_57, %c0_58] : memref<3x128x128xbf16, #tpu.memory_space<vmem>>, vector<1x128x128xbf16>
    %73 = vector.shape_cast %72 : vector<1x128x128xbf16> to vector<128x128xbf16>
    %cst_59 = arith.constant dense<0.000000e+00> : vector<32x128xf32>
    %74 = tpu.matmul %71, %73, %cst_59 {dimension_numbers = #tpu.dot_dimension_numbers<[1], [0], [0], [1], [0, 0, 1, 1], [], []>} : vector<32x128xbf16>, vector<128x128xbf16>, vector<32x128xf32> -> vector<32x128xf32>
    %c0_60 = arith.constant 0 : index
    %c1_61 = arith.constant 1 : index
    %c0_62 = arith.constant 0 : index
    %75 = vector.load %arg9[%c0_60, %c1_61, %c0_62] : memref<2x18x128xbf16, #tpu.memory_space<vmem>>, vector<2x16x128xbf16>
    %76 = vector.shape_cast %75 : vector<2x16x128xbf16> to vector<32x128xbf16>
    %c1_63 = arith.constant 1 : index
    %c0_64 = arith.constant 0 : index
    %c0_65 = arith.constant 0 : index
    %77 = vector.load %arg4[%c1_63, %c0_64, %c0_65] : memref<3x128x128xbf16, #tpu.memory_space<vmem>>, vector<1x128x128xbf16>
    %78 = vector.shape_cast %77 : vector<1x128x128xbf16> to vector<128x128xbf16>
    %cst_66 = arith.constant dense<0.000000e+00> : vector<32x128xf32>
    %79 = tpu.matmul %76, %78, %cst_66 {dimension_numbers = #tpu.dot_dimension_numbers<[1], [0], [0], [1], [0, 0, 1, 1], [], []>} : vector<32x128xbf16>, vector<128x128xbf16>, vector<32x128xf32> -> vector<32x128xf32>
    %80 = arith.addf %74, %79 : vector<32x128xf32>
    %c0_67 = arith.constant 0 : index
    %c2_68 = arith.constant 2 : index
    %c0_69 = arith.constant 0 : index
    %81 = vector.load %arg9[%c0_67, %c2_68, %c0_69] : memref<2x18x128xbf16, #tpu.memory_space<vmem>>, vector<2x16x128xbf16>
    %82 = vector.shape_cast %81 : vector<2x16x128xbf16> to vector<32x128xbf16>
    %c2_70 = arith.constant 2 : index
    %c0_71 = arith.constant 0 : index
    %c0_72 = arith.constant 0 : index
    %83 = vector.load %arg4[%c2_70, %c0_71, %c0_72] : memref<3x128x128xbf16, #tpu.memory_space<vmem>>, vector<1x128x128xbf16>
    %84 = vector.shape_cast %83 : vector<1x128x128xbf16> to vector<128x128xbf16>
    %cst_73 = arith.constant dense<0.000000e+00> : vector<32x128xf32>
    %85 = tpu.matmul %82, %84, %cst_73 {dimension_numbers = #tpu.dot_dimension_numbers<[1], [0], [0], [1], [0, 0, 1, 1], [], []>} : vector<32x128xbf16>, vector<128x128xbf16>, vector<32x128xf32> -> vector<32x128xf32>
    %86 = arith.addf %80, %85 : vector<32x128xf32>
    %c0_74 = arith.constant 0 : index
    %c0_75 = arith.constant 0 : index
    %87 = vector.load %arg5[%c0_74, %c0_75] : memref<1x128xf32, #tpu.memory_space<vmem>>, vector<1x128xf32>
    %c0_76 = arith.constant 0 : index
    %c0_77 = arith.constant 0 : index
    %88 = vector.load %arg6[%c0_76, %c0_77] : memref<1x128xf32, #tpu.memory_space<vmem>>, vector<1x128xf32>
    %cst_78 = arith.constant dense<0.000000e+00> : vector<128xf32>
    %89 = vector.multi_reduction <add>, %86, %cst_78 [0] : vector<32x128xf32> to vector<128xf32>
    %90 = vector.shape_cast %89 : vector<128xf32> to vector<1x128xf32>
    %c8_i32_79 = arith.constant 8 : i32
    %91 = tpu.dynamic_rotate %90 by %c8_i32_79 dim 1 : vector<1x128xf32>, i32 -> vector<1x128xf32>
    %92 = arith.addf %90, %91 : vector<1x128xf32>
    %c16_i32_80 = arith.constant 16 : i32
    %93 = tpu.dynamic_rotate %92 by %c16_i32_80 dim 1 : vector<1x128xf32>, i32 -> vector<1x128xf32>
    %94 = arith.addf %92, %93 : vector<1x128xf32>
    %c32_i32_81 = arith.constant 32 : i32
    %95 = tpu.dynamic_rotate %94 by %c32_i32_81 dim 1 : vector<1x128xf32>, i32 -> vector<1x128xf32>
    %96 = arith.addf %94, %95 : vector<1x128xf32>
    %c64_i32_82 = arith.constant 64 : i32
    %97 = tpu.dynamic_rotate %96 by %c64_i32_82 dim 1 : vector<1x128xf32>, i32 -> vector<1x128xf32>
    %98 = arith.addf %96, %97 : vector<1x128xf32>
    %cst_83 = arith.constant 0.001953125 : f32
    %99 = vector.broadcast %cst_83 : f32 to vector<1x128xf32>
    %100 = arith.mulf %98, %99 : vector<1x128xf32>
    %101 = vector.broadcast %100 : vector<1x128xf32> to vector<32x128xf32>
    %102 = arith.subf %86, %101 : vector<32x128xf32>
    %103 = arith.mulf %102, %102 : vector<32x128xf32>
    %cst_84 = arith.constant dense<0.000000e+00> : vector<128xf32>
    %104 = vector.multi_reduction <add>, %103, %cst_84 [0] : vector<32x128xf32> to vector<128xf32>
    %105 = vector.shape_cast %104 : vector<128xf32> to vector<1x128xf32>
    %c8_i32_85 = arith.constant 8 : i32
    %106 = tpu.dynamic_rotate %105 by %c8_i32_85 dim 1 : vector<1x128xf32>, i32 -> vector<1x128xf32>
    %107 = arith.addf %105, %106 : vector<1x128xf32>
    %c16_i32_86 = arith.constant 16 : i32
    %108 = tpu.dynamic_rotate %107 by %c16_i32_86 dim 1 : vector<1x128xf32>, i32 -> vector<1x128xf32>
    %109 = arith.addf %107, %108 : vector<1x128xf32>
    %c32_i32_87 = arith.constant 32 : i32
    %110 = tpu.dynamic_rotate %109 by %c32_i32_87 dim 1 : vector<1x128xf32>, i32 -> vector<1x128xf32>
    %111 = arith.addf %109, %110 : vector<1x128xf32>
    %c64_i32_88 = arith.constant 64 : i32
    %112 = tpu.dynamic_rotate %111 by %c64_i32_88 dim 1 : vector<1x128xf32>, i32 -> vector<1x128xf32>
    %113 = arith.addf %111, %112 : vector<1x128xf32>
    %cst_89 = arith.constant 0.001953125 : f32
    %114 = vector.broadcast %cst_89 : f32 to vector<1x128xf32>
    %115 = arith.mulf %113, %114 : vector<1x128xf32>
    %cst_90 = arith.constant 9.99999974E-6 : f32
    %116 = vector.broadcast %cst_90 : f32 to vector<1x128xf32>
    %117 = arith.addf %115, %116 : vector<1x128xf32>
    %118 = math.rsqrt %117 : vector<1x128xf32>
    %119 = arith.mulf %87, %118 : vector<1x128xf32>
    %120 = arith.mulf %100, %119 : vector<1x128xf32>
    %121 = arith.subf %88, %120 : vector<1x128xf32>
    %122 = vector.broadcast %119 : vector<1x128xf32> to vector<32x128xf32>
    %123 = arith.mulf %86, %122 : vector<32x128xf32>
    %124 = vector.broadcast %121 : vector<1x128xf32> to vector<32x128xf32>
    %125 = arith.addf %123, %124 : vector<32x128xf32>
    %cst_91 = arith.constant 0.000000e+00 : f32
    %126 = vector.broadcast %cst_91 : f32 to vector<32x128xf32>
    %127 = arith.maximumf %125, %126 : vector<32x128xf32>
    %128 = vector.shape_cast %0 : vector<2x16x128xf32> to vector<32x128xf32>
    %129 = arith.addf %127, %128 : vector<32x128xf32>
    %cst_92 = arith.constant 0.000000e+00 : f32
    %130 = vector.broadcast %cst_92 : f32 to vector<32x128xf32>
    %131 = arith.maximumf %129, %130 : vector<32x128xf32>
    %c0_93 = arith.constant 0 : index
    %c0_94 = arith.constant 0 : index
    %132 = vector.load %arg7[%c0_93, %c0_94] : memref<32x128xf32, #tpu.memory_space<vmem>>, vector<32x128xf32>
    tpu.vector_store %arg7[%c0_93, %c0_94], %131 {strides = array<i32>} : memref<32x128xf32, #tpu.memory_space<vmem>>, vector<32x128xf32>,
    return
  }
}

</mosaic_0001>

<bundles_post_ra>
// kernel: tpu_custom_call.1
= control target key start
LH: loop header
LB: loop body
LE: loop exit
PB: predicated region body
PF: predicated region fallthrough
CT: control target
= control target key end

     0   :  { %12 = vsyncpa [#allocation5], 0  ;;  %s1836_s0 = inlined_call_operand.hbm [shape: f32[2,16,128], index: 0, kind: input, shape index: {}]   ;;  %s1837_s1 = inlined_call_operand.hbm [shape: bf16[3,128,128], index: 1, kind: input, shape index: {}]   ;;  %s1838_s2 = inlined_call_operand.vmem [shape: f32[1,128], index: 2, kind: input, shape index: {}]   ;;  %s1839_s3 = inlined_call_operand.vmem [shape: f32[1,128], index: 3, kind: input, shape index: {}]   ;;  %s1840_s4 = inlined_call_operand.hbm [shape: bf16[3,128,128], index: 4, kind: input, shape index: {}]   ;;  %s1841_s5 = inlined_call_operand.vmem [shape: f32[1,128], index: 5, kind: input, shape index: {}]   ;;  %s1842_s6 = inlined_call_operand.vmem [shape: f32[1,128], index: 6, kind: input, shape index: {}]   ;;  %s1843_s7 = inlined_call_operand.hbm [shape: f32[32,128], index: 7, kind: output, shape index: {}]  }
   0x1   :  { %13 = vsyncpa [#allocation8], 0  ;;  %s32_s26 = sshll.u32 %s1837_s1, 4  ;;  %s33_s26 = int_to_ptr.hbm [resolvable:$true] %s32_s26 }
   0x2   :  { %14 = vsyncpa [#allocation6], 0  ;;  %s1554_s27 = smov [#allocation7]   ;;  %s19_s8 = sshll.u32 %s1836_s0, 4  ;;  %s20_s8 = int_to_ptr.hbm [resolvable:$true] %s19_s8 }
   0x3   :  { %s34_s28 = sshll.u32 %s1554_s27, 4  ;;  %s1555_s9 = smov 64   ;;  %s35_s28 = int_to_ptr.vmem [resolvable:$true] %s34_s28 }
   0x4   :  { %s1556_s10 = smov 4   ;;  %s1557_s11 = smov [#allocation4]  }
   0x5   :  { %40 = dma.hbm_to_vmem [thread:$0]  %s33_s26, 3072, %s35_s28, [#allocation8], %s1555_s9, %s1555_s9, %s1556_s10  }
   0x6   :  { %s21_s12 = sshll.u32 %s1557_s11, 4  ;;  %s1558_s13 = smov 128   ;;  %s22_s12 = int_to_ptr.vmem [resolvable:$true] %s21_s12 }
   0x7   :  { %s1559_s1 = smov 8   ;;  %s49_s16 = sshll.u32 %s1840_s4, 4  ;;  %s50_s16 = int_to_ptr.hbm [resolvable:$true] %s49_s16 }
   0x8   :  { %27 = dma.hbm_to_vmem [thread:$0]  %s20_s8, 512, %s22_s12, [#allocation5], %s1558_s13, %s1558_s13, %s1559_s1  }
   0x9   :  { %s1560_s0 = smov [#allocation9]  }
   0xa   :  { %s51_s17 = sshll.u32 %s1560_s0, 4  ;;  %s52_s17 = int_to_ptr.vmem [resolvable:$true] %s51_s17 }
   0xb   :  { %57 = dma.hbm_to_vmem [thread:$0]  %s50_s16, 3072, %s52_s17, [#allocation8], %s1555_s9, %s1555_s9, %s1556_s10  }
   0xc   :  { %1548 = dma.done.wait [#allocation5], 512  }
   0xd   :  { %1549 = vsyncadd [#allocation5], 4294966784 }
   0xe   :  { %1550 = dma.done.wait [#allocation8], 6144  }
   0xf   :  { %1551 = vsyncadd [#allocation8], 4294961152  ;;  %v1383_v0 = vld [vmem:[#allocation7 + $0x78] sm:$0xff]  ;;  %v1382_v3 = vld [vmem:[#allocation7 + $0x70] sm:$0xff]  ;;  %vm79_vm0 = vcmask 1040384   ;;  %vm142_vm6 = vcmask 1043456  }
  0x10   :  { %v1375_v1 = vld [vmem:[#allocation7 + $0x38] sm:$0xff]  ;;  %304 = vmatpush.bf16.msra.mxu0 %v1383_v0  ;;  %v1374_v4 = vld [vmem:[#allocation7 + $0x30] sm:$0xff]  ;;  %vm80_vm1 = vsmask.f32 256  ;;  %vm88_vm2 = vsmask.f32 7938 }
  0x11   :  { %v1391_v2 = vld [vmem:[#allocation7 + $0xb8] sm:$0xff]  ;;  %383 = vmatpush.bf16.msra.mxu1 %v1375_v1  ;;  %v1390_v5 = vld [vmem:[#allocation7 + $0xb0] sm:$0xff]  ;;  %v1381_v6 = vld [vmem:[#allocation7 + $0x68] sm:$0xff]  ;;  %vm100_vm5 = vsmask.f32 4368  ;;  %vm408_vm10 = vcmask 1042432  }
  0x12   :  { %498 = vmatpush.bf16.msra.mxu2 %v1391_v2  ;;  %v1373_v7 = vld [vmem:[#allocation7 + $0x28] sm:$0xff]  ;;  %vm1621_vm3 = vmand %vm79_vm0, %vm80_vm1  ;;  %v1380_v11 = vld [vmem:[#allocation7 + $0x60] sm:$0xff]  ;;  %vm180_vm9 = vsmask.f32 3328  ;;  %vm409_vm11 = vcmask 1046532   ;;  %s1561_s4 = smov 16  }
  0x13   :  { %v1389_v9 = vld [vmem:[#allocation7 + $0xa8] sm:$0xff]  ;;  %vm1626_vm4 = vmand %vm79_vm0, %vm88_vm2  ;;  %v1372_v12 = vld [vmem:[#allocation7 + $0x20] sm:$0xff]  ;;  %vm181_vm12 = vsmask.f32 7440  ;;  %s1562_s18 = smov 32   ;;  %s1140_s27 = sshll.u32 %s1843_s7, 4  ;;  %s1141_s27 = int_to_ptr.hbm [resolvable:$true] %s1140_s27 }
  0x14   :  { %305 = vmatpush.bf16.msra.mxu0 %v1382_v3  ;;  %v75_v13 = vld [vmem:[#allocation4] sm:$0xff]  ;;  %v76_v14 = vld [vmem:[#allocation4 + $0x8] sm:$0xff]  ;;  %v82_v15 = vld [vmem:[#allocation2] sm:$0x1] }
  0x15   :  { %384 = vmatpush.bf16.msra.mxu1 %v1374_v4  ;;  %v1388_v16 = vld [vmem:[#allocation7 + $0xa0] sm:$0xff]  ;;  %v83_v17 = vsel %vm1621_vm3, 0, %v82_v15  ;;  %v90_v18 = vld [vmem:[#allocation2 + $0x8] sm:$0x1]  ;;  %v96_v19 = vpack.c.bf16 %v75_v13, %v75_v13  ;;  %v97_v20 = vpack.c.bf16 %v76_v14, %v76_v14  ;;  %v77_v21 = vld [vmem:[#allocation4 + $0x10] sm:$0xff] }
  0x16   :  { %499 = vmatpush.bf16.msra.mxu2 %v1390_v5  ;;  %84 = vst [vmem:[#allocation2] sm:$0x1] %v83_v17  ;;  %v91_v22 = vsel %vm1626_vm4, 0, %v90_v18  ;;  %v78_v23 = vld [vmem:[#allocation4 + $0x18] sm:$0xff]  ;;  %v98_v25 = vpack.c.bf16 %v77_v21, %v77_v21  ;;  %v93_v32 = vld [vmem:[#allocation2 + $0x14] sm:$0x1]  ;;  %vm1640_vm7 = vmor %vm80_vm1, %vm100_vm5 }
  0x17   :  { %v85_v24 = vld [vmem:[#allocation2 + $0xc] sm:$0x1]  ;;  %92 = vst [vmem:[#allocation2 + $0x8] sm:$0x1] %v91_v22  ;;  %v103_v26 = vshrl.u32 %v96_v19, 16  ;;  %v106_v27 = vshll.u32 %v96_v19, 16  ;;  %v99_v33 = vpack.c.bf16 %v78_v23, %v78_v23  ;;  %vm1646_vm8 = vmand %vm142_vm6, %vm88_vm2 }
  0x18   :  { %306 = vmatpush.bf16.msra.mxu0 %v1381_v6  ;;  %v111_v28 = vshrl.u32 %v97_v20, 16  ;;  %v114_v29 = vshll.u32 %v97_v20, 16  ;;  %v1379_v30 = vld [vmem:[#allocation7 + $0x58] sm:$0xff]  ;;  %v86_v31 = vsel %vm1621_vm3, 0, %v85_v24  ;;  %v120_v34 = vshrl.u32 %v98_v25, 16  ;;  %v1378_v52 = vld [vmem:[#allocation7 + $0x50] sm:$0xff]  ;;  %vm1664_vm13 = vmor %vm408_vm10, %vm409_vm11 }
  0x19   :  { %385 = vmatpush.bf16.msra.mxu1 %v1373_v7  ;;  %v105_v35 = vrot.slane %v103_v26, 7  ;;  %87 = vst [vmem:[#allocation2 + $0xc] sm:$0x1] %v86_v31  ;;  %v94_v37 = vsel %vm1626_vm4, 0, %v93_v32  ;;  %v123_v38 = vshll.u32 %v98_v25, 16  ;;  %v1371_v39 = vld [vmem:[#allocation7 + $0x18] sm:$0xff]  ;;  %vm1672_vm14 = vmor %vm180_vm9, %vm181_vm12 }
  0x1a   :  { %500 = vmatpush.bf16.msra.mxu2 %v1389_v9  ;;  %v113_v36 = vrot.slane %v111_v28, 7  ;;  %95 = vst [vmem:[#allocation2 + $0x14] sm:$0x1] %v94_v37  ;;  %v122_v41 = vrot.slane %v120_v34, 7  ;;  %v128_v42 = vshrl.u32 %v99_v33, 16  ;;  %v131_v43 = vshll.u32 %v99_v33, 16 }
  0x1b   :  { %v1387_v44 = vld [vmem:[#allocation7 + $0x98] sm:$0xff]  ;;  %v108_v45 = vor.u32 %v106_v27, %v105_v35  ;;  %v109_v46 = vrot.slane %v105_v35, 4  ;;  %v1370_v56 = vld [vmem:[#allocation7 + $0x10] sm:$0xff]  ;;  %v1377_v3 = vld [vmem:[#allocation7 + $0x48] sm:$0xff] }
  0x1c   :  { %307 = vmatpush.bf16.msra.mxu0 %v1380_v11  ;;  %v116_v47 = vor.u32 %v114_v29, %v113_v36  ;;  %v118_v48 = vrot.slane %v113_v36, 4  ;;  %v126_v50 = vrot.slane %v122_v41, 4  ;;  %v130_v51 = vrot.slane %v128_v42, 7  ;;  %v1386_v61 = vld [vmem:[#allocation7 + $0x90] sm:$0xff]  ;;  %v1369_v4 = vld [vmem:[#allocation7 + $0x8] sm:$0xff]  ;;  %v1376_v7 = vld [vmem:[#allocation7 + $0x40] sm:$0xff] }
  0x1d   :  { %386 = vmatpush.bf16.msra.mxu1 %v1372_v12  ;;  %v144_v54 = vld [vmem:[#allocation2] sm:$0xf]  ;;  %v125_v55 = vor.u32 %v123_v38, %v122_v41  ;;  %v1385_v6 = vld [vmem:[#allocation7 + $0x88] sm:$0xff]  ;;  %v1368_v9 = vld [vmem:[#allocation7] sm:$0xff] }
  0x1e   :  { %501 = vmatpush.bf16.msra.mxu2 %v1388_v16  ;;  %v117_v53 = vsel %vm1640_vm7, %v109_v46, %v116_v47  ;;  %v145_v57 = vsel %vm1646_vm8, %v108_v45, %v144_v54  ;;  %v148_v58 = vld [vmem:[#allocation2 + $0x8] sm:$0x1]  ;;  %v133_v59 = vor.u32 %v131_v43, %v130_v51  ;;  %v135_v60 = vrot.slane %v130_v51, 4  ;;  %v1384_v12 = vld [vmem:[#allocation7 + $0x80] sm:$0xff] }
  0x1f   :  { %147 = vst [vmem:[#allocation2 + $0x4] sm:$0xf] %v117_v53  ;;  %v149_v62 = vsel %vm1621_vm3, %v118_v48, %v148_v58 }
  0x20   :  { %308 = vmatpush.bf16.msra.mxu0 %v1379_v30  ;;  %146 = vst [vmem:[#allocation2] sm:$0xf] %v145_v57  ;;  %v134_v63 = vsel %vm1640_vm7, %v126_v50, %v133_v59  ;;  %v151_v0 = vld [vmem:[#allocation2 + $0xc] sm:$0xf] }
  0x21   :  { %387 = vmatpush.bf16.msra.mxu1 %v1371_v39  ;;  %150 = vst [vmem:[#allocation2 + $0x8] sm:$0x1] %v149_v62  ;;  %v152_v1 = vsel %vm1646_vm8, %v125_v55, %v151_v0  ;;  %v155_v2 = vld [vmem:[#allocation2 + $0x14] sm:$0x1] }
  0x22   :  { %502 = vmatpush.bf16.msra.mxu2 %v1387_v44  ;;  %154 = vst [vmem:[#allocation2 + $0x10] sm:$0xf] %v134_v63  ;;  %v156_v5 = vsel %vm1621_vm3, %v135_v60, %v155_v2 }
  0x23   :  { %153 = vst [vmem:[#allocation2 + $0xc] sm:$0xf] %v152_v1 }
  0x24   :  { %309 = vmatpush.bf16.msra.mxu0 %v1378_v52  ;;  %157 = vst [vmem:[#allocation2 + $0x14] sm:$0x1] %v156_v5 }
  0x25   :  { %388 = vmatpush.bf16.msra.mxu1 %v1370_v56 }
  0x26   :  { %503 = vmatpush.bf16.msra.mxu2 %v1386_v61  ;;  %v159_v11 = vld [vmem:[#allocation2 + $0x4] sm:$0xf] }
  0x27   :  { %v158_v13 = vld [vmem:[#allocation2] sm:$0xf]  ;;  %v193_v14 = vshll.u32 %v159_v11, 16  ;;  %v197_v15 = vshrl.u32 %v159_v11, 16  ;;  %v413_v16 = vrot.slane %v159_v11, 5 }
  0x28   :  { %310 = vmatpush.bf16.msra.mxu0 %v1377_v3  ;;  %v178_v17 = vld [vmem:[#allocation2 + $0x8] sm:$0x1]  ;;  %v184_v18 = vshrl.u32 %v158_v13, 16  ;;  %v187_v19 = vshll.u32 %v158_v13, 16  ;;  %v1366_v20 = vld [vmem:[#allocation2] sm:$0xff] }
  0x29   :  { %389 = vmatpush.bf16.msra.mxu1 %v1369_v4  ;;  %v402_v21 = vld [vmem:[#allocation2] sm:$0xe]  ;;  %v195_v23 = vrot.slane %v193_v14, 5  ;;  %v199_v24 = vrot.slane %v197_v15, 4  ;;  %v203_v25 = vshll.u32 %v178_v17, 16  ;;  %v415_v30 = vrot.slane %v413_v16, 4 }
  0x2a   :  { %504 = vmatpush.bf16.msra.mxu2 %v1385_v6  ;;  %v1226_v26 = vrot.slane %v402_v21, 9  ;;  %v161_v27 = vld [vmem:[#allocation2 + $0x10] sm:$0xf]  ;;  %v186_v28 = vrot.slane %v184_v18, 4  ;;  %v189_v29 = vrot.slane %v187_v19, 5  ;;  %v416_v31 = vrot.slane %v178_v17, 5 }
  0x2b   :  { %v160_v32 = vld [vmem:[#allocation2 + $0xc] sm:$0xf]  ;;  %v200_v33 = vor.u32 %v199_v24, %v195_v23  ;;  %v205_v34 = vrot.slane %v203_v25, 5  ;;  %v217_v45 = vshll.u32 %v161_v27, 16  ;;  %v179_v47 = vld [vmem:[#allocation2 + $0x14] sm:$0x1] }
  0x2c   :  { %311 = vmatpush.bf16.msra.mxu0 %v1376_v7  ;;  %v414_v35 = vsel %vm1664_vm13, %v1226_v26, %v413_v16  ;;  %v208_v36 = vshrl.u32 %v160_v32, 16  ;;  %v190_v38 = vor.u32 %v189_v29, %v186_v28  ;;  %v417_v39 = vsel %vm1664_vm13, %v415_v30, %v416_v31  ;;  %v403_v55 = vld [vmem:[#allocation2 + $0xc] sm:$0xe] }
  0x2d   :  { %390 = vmatpush.bf16.msra.mxu1 %v1368_v9  ;;  %v442_v41 = vunpack.c.l.b16 %v414_v35  ;;  %v211_v42 = vshll.u32 %v160_v32, 16  ;;  %v201_v43 = vrot.slane %v200_v33, 4  ;;  %v443_v44 = vunpack.c.l.b16 %v417_v39  ;;  %v1367_v15 = vld [vmem:[#allocation2 + $0xc] sm:$0xff] }
  0x2e   :  { %505 = vmatpush.bf16.msra.mxu2 %v1384_v12  ;;  %v191_v46 = vrot.slane %v190_v38, 4  ;;  %v210_v48 = vrot.slane %v208_v36, 4  ;;  %v221_v51 = vshrl.u32 %v161_v27, 16  ;;  %v219_v54 = vrot.slane %v217_v45, 5 }
  0x2f   :  { %v213_v50 = vrot.slane %v211_v42, 5  ;;  %v206_v52 = vsel %vm1672_vm14, %v201_v43, %v205_v34  ;;  %v446_v53 = vpack.c.b16 %v443_v44, %v442_v41  ;;  %v227_v60 = vshll.u32 %v179_v47, 16 }
  0x30   :  { %391 = vmatmul.bf16.vlgmr.msra.gmra.mxu1 %v1366_v20  ;;  %v196_v56 = vsel %vm1672_vm14, %v191_v46, %v195_v23  ;;  %v249_v57 = vunpack.c.l.b16 %v206_v52  ;;  %v223_v58 = vrot.slane %v221_v51, 4  ;;  %v420_v61 = vrot.slane %v161_v27, 5 }
  0x31   :  { %v248_v59 = vunpack.c.l.b16 %v196_v56  ;;  %506 = vmatmul.bf16.vlgmr.msra.gmra.mxu2 %v446_v53  ;;  %v214_v62 = vor.u32 %v213_v50, %v210_v48  ;;  %v1227_v0 = vrot.slane %v403_v55, 9  ;;  %v423_v1 = vrot.slane %v179_v47, 5 }
  0x32   :  { %v224_v63 = vor.u32 %v223_v58, %v219_v54  ;;  %v422_v3 = vrot.slane %v420_v61, 4  ;;  %v229_v4 = vrot.slane %v227_v60, 5 }
  0x33   :  { %v252_v2 = vpack.c.b16 %v249_v57, %v248_v59  ;;  %v215_v5 = vrot.slane %v214_v62, 4  ;;  %v421_v7 = vsel %vm1664_vm13, %v1227_v0, %v420_v61 }
  0x34   :  { %v225_v6 = vrot.slane %v224_v63, 4  ;;  %v424_v9 = vsel %vm1664_vm13, %v422_v3, %v423_v1  ;;  %v444_v11 = vunpack.c.l.b16 %v421_v7 }
  0x35   :  { %312 = vmatmul.bf16.vlgmr.msra.gmra.mxu0 %v252_v2  ;;  %v445_v12 = vunpack.c.l.b16 %v424_v9  ;;  %v220_v13 = vsel %vm1672_vm14, %v215_v5, %v219_v54 }
  0x36   :  { %v230_v14 = vsel %vm1672_vm14, %v225_v6, %v229_v4  ;;  %v250_v16 = vunpack.c.l.b16 %v220_v13 }
  0x37   :  { %v251_v17 = vunpack.c.l.b16 %v230_v14  ;;  %v447_v18 = vpack.c.b16 %v445_v12, %v444_v11 }
  0x39   :  { %v253_v19 = vpack.c.b16 %v251_v17, %v250_v16 }
  0x40   :  { %396 = vmatmul.bf16.gmra.mxu1 %v1367_v15 }
  0x41   :  { %511 = vmatmul.bf16.gmra.mxu2 %v447_v18 }
  0x45   :  { %317 = vmatmul.bf16.gmra.mxu0 %v253_v19 }
  0xad   :  { %v392_v20 = vpop.f32.mrf.mxu1 }
  0xb2   :  { %v313_v21 = vpop.f32.mrf.mxu0 }
  0xb3   :  { %v393_v30 = vadd.f32 %v392_v20, %v313_v21 }
  0xb4   :  { %v507_v23 = vpop.f32.mrf.mxu2 }
  0xb5   :  { %v394_v24 = vpop.f32.mrf.mxu1  ;;  %v1692_v35 = vadd.f32 %v507_v23, %v393_v30  ;;  %v608_v23 = vld [vmem:[#allocation3] sm:$0x1] }
  0xba   :  { %v315_v25 = vpop.f32.mrf.mxu0 }
  0xbb   :  { %v395_v31 = vadd.f32 %v394_v24, %v315_v25  ;;  %v609_v24 = vsel %vm1621_vm3, 0, %v608_v23  ;;  %v611_v25 = vld [vmem:[#allocation3 + $0xc] sm:$0x1] }
  0xbc   :  { %v509_v26 = vpop.f32.mrf.mxu2  ;;  %610 = vst [vmem:[#allocation3] sm:$0x1] %v609_v24 }
  0xbd   :  { %v397_v27 = vpop.f32.mrf.mxu1  ;;  %v1690_v33 = vadd.f32 %v509_v26, %v395_v31  ;;  %v614_v26 = vld [vmem:[#allocation3 + $0x8] sm:$0x1] }
  0xbf   :  { %v523_v39 = vadd.f32 %v1690_v33, %v1692_v35 }
  0xc2   :  { %v318_v28 = vpop.f32.mrf.mxu0 }
  0xc3   :  { %v398_v32 = vadd.f32 %v397_v27, %v318_v28  ;;  %v612_v27 = vsel %vm1621_vm3, 0, %v611_v25  ;;  %v615_v28 = vsel %vm1626_vm4, 0, %v614_v26 }
  0xc4   :  { %v512_v29 = vpop.f32.mrf.mxu2  ;;  %613 = vst [vmem:[#allocation3 + $0xc] sm:$0x1] %v612_v27  ;;  %v1402_v27 = vld [vmem:[#allocation9 + $0x40] sm:$0xff] }
  0xc5   :  { %v399_v34 = vpop.f32.mrf.mxu1  ;;  %v1694_v36 = vadd.f32 %v512_v29, %v398_v32  ;;  %v617_v29 = vld [vmem:[#allocation3 + $0x14] sm:$0x1]  ;;  %616 = vst [vmem:[#allocation3 + $0x8] sm:$0x1] %v615_v28 }
  0xc6   :  { %v618_v30 = vsel %vm1626_vm4, 0, %v617_v29 }
  0xc7   :  { %v524_v43 = vadd.f32 %v523_v39, %v1694_v36  ;;  %619 = vst [vmem:[#allocation3 + $0x14] sm:$0x1] %v618_v30 }
  0xca   :  { %v320_v38 = vpop.f32.mrf.mxu0 }
  0xcb   :  { %v400_v41 = vadd.f32 %v399_v34, %v320_v38  ;;  %v1401_v34 = vld [vmem:[#allocation9 + $0x38] sm:$0xff]  ;;  %v1400_v38 = vld [vmem:[#allocation9 + $0x30] sm:$0xff] }
  0xcc   :  { %v514_v42 = vpop.f32.mrf.mxu2  ;;  %900 = vmatpush.bf16.msrb.mxu0 %v1401_v34  ;;  %1418 = vmatpush.bf16.msrb.mxu2 %v1401_v34 }
  0xcd   :  { %v1699_v44 = vadd.f32 %v514_v42, %v400_v41 }
  0xcf   :  { %v525_v45 = vadd.f32 %v524_v43, %v1699_v44  ;;  %v1725_v43 = vld [vmem:[#allocation9 + $0xb8] sm:$0xff] }
  0xd0   :  { %901 = vmatpush.bf16.msrb.mxu0 %v1400_v38  ;;  %1419 = vmatpush.bf16.msrb.mxu2 %v1400_v38 }
  0xd1   :  { %v526_v46 = vrot.slane %v525_v45, 4  ;;  %1012 = vmatpush.bf16.msrb.mxu1 %v1725_v43 }
  0xd3   :  { %v527_v47 = vadd.f32 %v526_v46, %v525_v45  ;;  %v1399_v45 = vld [vmem:[#allocation9 + $0x28] sm:$0xff]  ;;  %v1409_v46 = vld [vmem:[#allocation9 + $0x78] sm:$0xff] }
  0xd4   :  { %902 = vmatpush.bf16.msrb.mxu0 %v1399_v45  ;;  %1420 = vmatpush.bf16.msrb.mxu2 %v1399_v45 }
  0xd5   :  { %v528_v48 = vrot.slane %v527_v47, 2  ;;  %821 = vmatpush.bf16.msra.mxu3 %v1409_v46  ;;  %v668_v46 = vld [vmem:[#allocation3 + $0x8] sm:$0x1] }
  0xd7   :  { %v529_v50 = vadd.f32 %v528_v48, %v527_v47  ;;  %v1728_v47 = vld [vmem:[#allocation9 + $0xb0] sm:$0xff]  ;;  %v1398_v48 = vld [vmem:[#allocation9 + $0x20] sm:$0xff] }
  0xd8   :  { %1013 = vmatpush.bf16.msrb.mxu1 %v1728_v47  ;;  %903 = vmatpush.bf16.msrb.mxu0 %v1398_v48 }
  0xd9   :  { %v530_v51 = vrot.slane %v529_v50, 1  ;;  %1421 = vmatpush.bf16.msrb.mxu2 %v1398_v48 }
  0xdb   :  { %v531_v52 = vadd.f32 %v530_v51, %v529_v50  ;;  %v1408_v50 = vld [vmem:[#allocation9 + $0x70] sm:$0xff]  ;;  %v1731_v51 = vld [vmem:[#allocation9 + $0xa8] sm:$0xff] }
  0xdc   :  { %822 = vmatpush.bf16.msra.mxu3 %v1408_v50  ;;  %1014 = vmatpush.bf16.msrb.mxu1 %v1731_v51 }
  0xdd   :  { %532 = vrot.lane.b32.xlu0 %v531_v52, %s1559_s1 }
 0x14f   :  { %v533_v53 = vpop.permute.xlu0 %532 }
 0x150   :  { %v534_v54 = vadd.f32 %v533_v53, %v531_v52  ;;  %v1397_v52 = vld [vmem:[#allocation9 + $0x18] sm:$0xff] }
 0x151   :  { %904 = vmatpush.bf16.msrb.mxu0 %v1397_v52  ;;  %1422 = vmatpush.bf16.msrb.mxu2 %v1397_v52 }
 0x152   :  { %535 = vrot.lane.b32.xlu0 %v534_v54, %s1561_s4 }
 0x1c4   :  { %v536_v55 = vpop.permute.xlu0 %535 }
 0x1c5   :  { %v537_v56 = vadd.f32 %v536_v55, %v534_v54  ;;  %v1407_v55 = vld [vmem:[#allocation9 + $0x68] sm:$0xff] }
 0x1c6   :  { %823 = vmatpush.bf16.msra.mxu3 %v1407_v55 }
 0x1c7   :  { %538 = vrot.lane.b32.xlu1 %v537_v56, %s1562_s18 }
 0x239   :  { %v539_v57 = vpop.permute.xlu1 %538 }
 0x23a   :  { %v540_v58 = vadd.f32 %v539_v57, %v537_v56  ;;  %v1734_v56 = vld [vmem:[#allocation9 + $0xa0] sm:$0xff] }
 0x23b   :  { %1015 = vmatpush.bf16.msrb.mxu1 %v1734_v56 }
 0x23c   :  { %541 = vrot.lane.b32.xlu1 %v540_v58, %s1555_s9 }
 0x2ae   :  { %v542_v59 = vpop.permute.xlu1 %541 }
 0x2af   :  { %v543_v60 = vadd.f32 %v542_v59, %v540_v58  ;;  %v1396_v58 = vld [vmem:[#allocation9 + $0x10] sm:$0xff] }
 0x2b0   :  { %905 = vmatpush.bf16.msrb.mxu0 %v1396_v58  ;;  %1423 = vmatpush.bf16.msrb.mxu2 %v1396_v58 }
 0x2b1   :  { %v1706_v61 = vmul.f32 0.001953125, %v543_v60  ;;  %v1406_v60 = vld [vmem:[#allocation9 + $0x60] sm:$0xff] }
 0x2b2   :  { %824 = vmatpush.bf16.msra.mxu3 %v1406_v60 }
 0x2b3   :  { %v545_v62 = vperm.slane %v1706_v61, 0 }
 0x2b5   :  { %v546_v63 = vsub.f32 %v1692_v35, %v545_v62  ;;  %v547_v0 = vsub.f32 %v1690_v33, %v545_v62  ;;  %v548_v1 = vsub.f32 %v1694_v36, %v545_v62  ;;  %v549_v4 = vsub.f32 %v1699_v44, %v545_v62  ;;  %v1737_v62 = vld [vmem:[#allocation9 + $0x98] sm:$0xff] }
 0x2b6   :  { %1016 = vmatpush.bf16.msrb.mxu1 %v1737_v62 }
 0x2b7   :  { %v550_v2 = vmul.f32 %v546_v63, %v546_v63  ;;  %v551_v3 = vmul.f32 %v547_v0, %v547_v0  ;;  %v552_v5 = vmul.f32 %v548_v1, %v548_v1  ;;  %v553_v7 = vmul.f32 %v549_v4, %v549_v4  ;;  %v1395_v63 = vld [vmem:[#allocation9 + $0x8] sm:$0xff]  ;;  %v1405_v1 = vld [vmem:[#allocation9 + $0x58] sm:$0xff] }
 0x2b8   :  { %906 = vmatpush.bf16.msrb.mxu0 %v1395_v63  ;;  %1424 = vmatpush.bf16.msrb.mxu2 %v1395_v63 }
 0x2b9   :  { %v554_v6 = vadd.f32 %v551_v3, %v550_v2  ;;  %v1740_v2 = vld [vmem:[#allocation9 + $0x90] sm:$0xff]  ;;  %825 = vmatpush.bf16.msra.mxu3 %v1405_v1 }
 0x2ba   :  { %v521_v3 = vld [vmem:[%s1838_s2] sm:$0x1]  ;;  %1017 = vmatpush.bf16.msrb.mxu1 %v1740_v2 }
 0x2bb   :  { %v555_v9 = vadd.f32 %v554_v6, %v552_v5  ;;  %v1394_v5 = vld [vmem:[#allocation9] sm:$0xff] }
 0x2bc   :  { %907 = vmatpush.bf16.msrb.mxu0 %v1394_v5  ;;  %1425 = vmatpush.bf16.msrb.mxu2 %v1394_v5 }
 0x2bd   :  { %v556_v11 = vadd.f32 %v555_v9, %v553_v7  ;;  %v1404_v9 = vld [vmem:[#allocation9 + $0x50] sm:$0xff] }
 0x2be   :  { %826 = vmatpush.bf16.msra.mxu3 %v1404_v9 }
 0x2bf   :  { %v557_v12 = vrot.slane %v556_v11, 4 }
 0x2c1   :  { %v558_v13 = vadd.f32 %v557_v12, %v556_v11  ;;  %v522_v11 = vld [vmem:[%s1839_s3] sm:$0x1] }
 0x2c3   :  { %v559_v14 = vrot.slane %v558_v13, 2 }
 0x2c5   :  { %v560_v15 = vadd.f32 %v559_v14, %v558_v13  ;;  %v1750_v14 = vld [vmem:[#allocation9 + $0x88] sm:$0xff] }
 0x2c6   :  { %1018 = vmatpush.bf16.msrb.mxu1 %v1750_v14 }
 0x2c7   :  { %v561_v16 = vrot.slane %v560_v15, 1 }
 0x2c9   :  { %v562_v17 = vadd.f32 %v561_v16, %v560_v15  ;;  %v1403_v16 = vld [vmem:[#allocation9 + $0x48] sm:$0xff] }
 0x2ca   :  { %827 = vmatpush.bf16.msra.mxu3 %v1403_v16 }
 0x2cb   :  { %563 = vrot.lane.b32.xlu2 %v562_v17, %s1559_s1 }
 0x2ce   :  { %828 = vmatpush.bf16.msra.mxu3 %v1402_v27 }
 0x2d2   :  { %1426 = vmatpush.bf16.msrb.mxu3 %v1725_v43 }
 0x2d6   :  { %1427 = vmatpush.bf16.msrb.mxu3 %v1728_v47 }
 0x2da   :  { %1428 = vmatpush.bf16.msrb.mxu3 %v1731_v51 }
 0x2de   :  { %1429 = vmatpush.bf16.msrb.mxu3 %v1734_v56 }
 0x2e2   :  { %1430 = vmatpush.bf16.msrb.mxu3 %v1737_v62 }
 0x2e6   :  { %1431 = vmatpush.bf16.msrb.mxu3 %v1740_v2 }
 0x2ea   :  { %1432 = vmatpush.bf16.msrb.mxu3 %v1750_v14 }
 0x325   :  { %v564_v18 = vpop.permute.xlu2 %563 }
 0x326   :  { %v565_v19 = vadd.f32 %v564_v18, %v562_v17  ;;  %v1754_v18 = vld [vmem:[#allocation9 + $0x80] sm:$0xff] }
 0x327   :  { %1019 = vmatpush.bf16.msrb.mxu1 %v1754_v18  ;;  %1433 = vmatpush.bf16.msrb.mxu3 %v1754_v18 }
 0x328   :  { %566 = vrot.lane.b32.xlu2 %v565_v19, %s1561_s4 }
 0x382   :  { %v567_v20 = vpop.permute.xlu2 %566 }
 0x383   :  { %v568_v21 = vadd.f32 %v567_v20, %v565_v19 }
 0x385   :  { %569 = vrot.lane.b32.xlu0 %v568_v21, %s1562_s18 }
 0x3f7   :  { %v570_v31 = vpop.permute.xlu0 %569 }
 0x3f8   :  { %v571_v32 = vadd.f32 %v570_v31, %v568_v21 }
 0x3fa   :  { %572 = vrot.lane.b32.xlu1 %v571_v32, %s1555_s9 }
 0x46c   :  { %v573_v39 = vpop.permute.xlu1 %572 }
 0x46d   :  { %v574_v41 = vadd.f32 %v573_v39, %v571_v32 }
 0x46f   :  { %v575_v42 = vmul.f32 0.001953125, %v574_v41 }
 0x471   :  { %v576_v10 = vadd.f32 1e-05, %v575_v42 }
 0x473   :  { %1444 = vrsqrt.f32 %v576_v10  ;;  %vm583_vm0 = vweird.f32 %v576_v10 }
 0x479   :  { %v1445_v53 = vpop.eup %1444 }
 0x47a   :  { %v578_v54 = vmul.f32 %v1445_v53, %v576_v10  ;;  %vm584_vm15 = vweird.f32 %v1445_v53 }
 0x47b   :  { %vm585_vm1 = vmor %vm583_vm0, %vm584_vm15 }
 0x47c   :  { %v579_v57 = vmul.f32 %v1445_v53, %v578_v54  ;;  %v675_v54 = vld [vmem:[#allocation3 + $0x14] sm:$0x1] }
 0x47e   :  { %v580_v59 = vmul.f32 0.5, %v579_v57 }
 0x480   :  { %v581_v0 = vsub.f32 1.5, %v580_v59  ;;  %v664_v59 = vld [vmem:[#allocation3] sm:$0xf] }
 0x482   :  { %v582_v4 = vmul.f32 %v1445_v53, %v581_v0 }
 0x484   :  { %v586_v6 = vsel %vm585_vm1, %v1445_v53, %v582_v4 }
 0x485   :  { %v587_v7 = vmul.f32 %v586_v6, %v521_v3  ;;  %v671_v3 = vld [vmem:[#allocation3 + $0xc] sm:$0xf] }
 0x487   :  { %v588_v12 = vmul.f32 %v587_v7, %v1706_v61  ;;  %v591_v13 = vperm.slane %v587_v7, 0 }
 0x489   :  { %v589_v15 = vsub.f32 %v522_v11, %v588_v12  ;;  %v593_v17 = vmul.f32 %v591_v13, %v1692_v35  ;;  %v594_v19 = vmul.f32 %v591_v13, %v1690_v33  ;;  %v595_v20 = vmul.f32 %v591_v13, %v1694_v36 }
 0x48a   :  { %v596_v21 = vmul.f32 %v591_v13, %v1699_v44 }
 0x48b   :  { %v598_v23 = vperm.slane %v589_v15, 0 }
 0x48d   :  { %v600_v61 = vadd.f32 %v598_v23, %v593_v17  ;;  %v601_v24 = vadd.f32 %v598_v23, %v594_v19  ;;  %v602_v25 = vadd.f32 %v598_v23, %v595_v20  ;;  %v603_v26 = vadd.f32 %v598_v23, %v596_v21 }
 0x48f   :  { %v604_v35 = vmax.f32 %v600_v61, 0.0  ;;  %v605_v28 = vmax.f32 %v601_v24, 0.0  ;;  %v606_v29 = vmax.f32 %v602_v25, 0.0  ;;  %v607_v30 = vmax.f32 %v603_v26, 0.0 }
 0x491   :  { %v620_v31 = vpack.c.bf16 %v604_v35, %v604_v35  ;;  %v621_v32 = vpack.c.bf16 %v605_v28, %v605_v28  ;;  %v622_v33 = vpack.c.bf16 %v606_v29, %v606_v29  ;;  %v623_v34 = vpack.c.bf16 %v607_v30, %v607_v30 }
 0x493   :  { %v625_v36 = vshrl.u32 %v620_v31, 16  ;;  %v633_v44 = vshrl.u32 %v621_v32, 16  ;;  %v642_v38 = vshrl.u32 %v622_v33, 16  ;;  %v650_v39 = vshrl.u32 %v623_v34, 16 }
 0x494   :  { %v628_v42 = vshll.u32 %v620_v31, 16  ;;  %v636_v10 = vshll.u32 %v621_v32, 16  ;;  %v645_v50 = vshll.u32 %v622_v33, 16  ;;  %v653_v53 = vshll.u32 %v623_v34, 16 }
 0x495   :  { %v627_v41 = vrot.slane %v625_v36, 7  ;;  %v635_v45 = vrot.slane %v633_v44, 7  ;;  %v644_v48 = vrot.slane %v642_v38, 7  ;;  %v652_v52 = vrot.slane %v650_v39, 7 }
 0x497   :  { %v630_v55 = vor.u32 %v628_v42, %v627_v41  ;;  %v631_v57 = vrot.slane %v627_v41, 4  ;;  %v638_v58 = vor.u32 %v636_v10, %v635_v45  ;;  %v640_v43 = vrot.slane %v635_v45, 4 }
 0x498   :  { %v647_v60 = vor.u32 %v645_v50, %v644_v48  ;;  %v648_v63 = vrot.slane %v644_v48, 4  ;;  %v655_v0 = vor.u32 %v653_v53, %v652_v52  ;;  %v657_v1 = vrot.slane %v652_v52, 4 }
 0x499   :  { %v639_v4 = vsel %vm1640_vm7, %v631_v57, %v638_v58  ;;  %v669_v5 = vsel %vm1621_vm3, %v640_v43, %v668_v46  ;;  %v665_v7 = vsel %vm1646_vm8, %v630_v55, %v664_v59 }
 0x49a   :  { %v656_v47 = vsel %vm1640_vm7, %v648_v63, %v655_v0  ;;  %667 = vst [vmem:[#allocation3 + $0x4] sm:$0xf] %v639_v4  ;;  %v676_v6 = vsel %vm1621_vm3, %v657_v1, %v675_v54  ;;  %v672_v9 = vsel %vm1646_vm8, %v647_v60, %v671_v3 }
 0x49b   :  { %670 = vst [vmem:[#allocation3 + $0x8] sm:$0x1] %v669_v5 }
 0x49c   :  { %674 = vst [vmem:[#allocation3 + $0x10] sm:$0xf] %v656_v47 }
 0x49d   :  { %677 = vst [vmem:[#allocation3 + $0x14] sm:$0x1] %v676_v6 }
 0x49e   :  { %666 = vst [vmem:[#allocation3] sm:$0xf] %v665_v7 }
 0x49f   :  { %673 = vst [vmem:[#allocation3 + $0xc] sm:$0xf] %v672_v9 }
 0x4a1   :  { %v679_v40 = vld [vmem:[#allocation3 + $0x4] sm:$0xf] }
 0x4a2   :  { %v698_v11 = vld [vmem:[#allocation3 + $0x8] sm:$0x1]  ;;  %v927_v12 = vrot.slane %v679_v40, 5  ;;  %v710_v8 = vshll.u32 %v679_v40, 16  ;;  %v714_v13 = vshrl.u32 %v679_v40, 16 }
 0x4a3   :  { %v930_v15 = vrot.slane %v698_v11, 5  ;;  %v720_v21 = vshll.u32 %v698_v11, 16  ;;  %v681_v26 = vld [vmem:[#allocation3 + $0x10] sm:$0xf] }
 0x4a4   :  { %v929_v51 = vrot.slane %v927_v12, 4  ;;  %v712_v16 = vrot.slane %v710_v8, 5  ;;  %v716_v17 = vrot.slane %v714_v13, 4  ;;  %v734_v34 = vshll.u32 %v681_v26, 16  ;;  %v699_v55 = vld [vmem:[#allocation3 + $0x14] sm:$0x1] }
 0x4a5   :  { %v1392_v19 = vld [vmem:[#allocation3] sm:$0xff]  ;;  %v722_v33 = vrot.slane %v720_v21, 5  ;;  %v738_v39 = vshrl.u32 %v681_v26, 16  ;;  %v744_v58 = vshll.u32 %v699_v55, 16  ;;  %v934_v18 = vrot.slane %v681_v26, 5 }
 0x4a6   :  { %v919_v49 = vld [vmem:[#allocation3] sm:$0xe]  ;;  %v1393_v23 = vld [vmem:[#allocation3 + $0xc] sm:$0xff]  ;;  %v931_v56 = vsel %vm1664_vm13, %v929_v51, %v930_v15  ;;  %908 = vmatmul.bf16.vlgmr.msrb.gmra.mxu0 %v1392_v19  ;;  %v717_v27 = vor.u32 %v716_v17, %v712_v16  ;;  %v736_v10 = vrot.slane %v734_v34, 5  ;;  %v937_v7 = vrot.slane %v699_v55, 5 }
 0x4a7   :  { %v678_v20 = vld [vmem:[#allocation3] sm:$0xf]  ;;  %v1332_v61 = vrot.slane %v919_v49, 9  ;;  %v957_v62 = vunpack.c.l.b16 %v931_v56  ;;  %v680_v35 = vld [vmem:[#allocation3 + $0xc] sm:$0xf]  ;;  %913 = vmatmul.bf16.vlgmr.msrb.gmra.mxu2 %v1393_v23  ;;  %v740_v52 = vrot.slane %v738_v39, 4 }
 0x4a8   :  { %v701_v24 = vshrl.u32 %v678_v20, 16  ;;  %v704_v25 = vshll.u32 %v678_v20, 16  ;;  %v718_v32 = vrot.slane %v717_v27, 4  ;;  %v725_v44 = vshrl.u32 %v680_v35, 16  ;;  %v920_v5 = vld [vmem:[#allocation3 + $0xc] sm:$0xe] }
 0x4a9   :  { %v928_v28 = vsel %vm1664_vm13, %v1332_v61, %v927_v12  ;;  %v728_v38 = vshll.u32 %v680_v35, 16  ;;  %v741_v57 = vor.u32 %v740_v52, %v736_v10  ;;  %v746_v60 = vrot.slane %v744_v58, 5 }
 0x4aa   :  { %v703_v29 = vrot.slane %v701_v24, 4  ;;  %v706_v30 = vrot.slane %v704_v25, 5  ;;  %v956_v31 = vunpack.c.l.b16 %v928_v28  ;;  %v723_v41 = vsel %vm1672_vm14, %v718_v32, %v722_v33 }
 0x4ab   :  { %v766_v45 = vunpack.c.l.b16 %v723_v41  ;;  %v727_v48 = vrot.slane %v725_v44, 4  ;;  %v730_v50 = vrot.slane %v728_v38, 5  ;;  %v742_v59 = vrot.slane %v741_v57, 4 }
 0x4ac   :  { %v707_v36 = vor.u32 %v706_v30, %v703_v29  ;;  %v960_v2 = vpack.c.b16 %v957_v62, %v956_v31  ;;  %v936_v47 = vrot.slane %v934_v18, 4  ;;  %v1333_v6 = vrot.slane %v920_v5, 9 }
 0x4ad   :  { %v731_v14 = vor.u32 %v730_v50, %v727_v48  ;;  %v747_v0 = vsel %vm1672_vm14, %v742_v59, %v746_v60 }
 0x4ae   :  { %v708_v42 = vrot.slane %v707_v36, 4  ;;  %1020 = vmatmul.bf16.vlgmr.msrb.gmra.mxu1 %v960_v2  ;;  %v768_v3 = vunpack.c.l.b16 %v747_v0  ;;  %v938_v9 = vsel %vm1664_vm13, %v936_v47, %v937_v7  ;;  %v935_v40 = vsel %vm1664_vm13, %v1333_v6, %v934_v18 }
 0x4af   :  { %v732_v43 = vrot.slane %v731_v14, 4  ;;  %v959_v11 = vunpack.c.l.b16 %v938_v9  ;;  %v958_v12 = vunpack.c.l.b16 %v935_v40 }
 0x4b0   :  { %v713_v46 = vsel %vm1672_vm14, %v708_v42, %v712_v16 }
 0x4b1   :  { %v765_v53 = vunpack.c.l.b16 %v713_v46  ;;  %v737_v63 = vsel %vm1672_vm14, %v732_v43, %v736_v10  ;;  %v961_v8 = vpack.c.b16 %v959_v11, %v958_v12 }
 0x4b2   :  { %v767_v1 = vunpack.c.l.b16 %v737_v63 }
 0x4b3   :  { %v769_v54 = vpack.c.b16 %v766_v45, %v765_v53 }
 0x4b4   :  { %v770_v4 = vpack.c.b16 %v768_v3, %v767_v1 }
 0x4b5   :  { %829 = vmatmul.bf16.vlgmr.msra.gmra.mxu3 %v769_v54 }
 0x4c5   :  { %834 = vmatmul.bf16.gmra.mxu3 %v770_v4 }
 0x4d5   :  { %1025 = vmatmul.bf16.vlgmr.msrb.gmra.mxu3 %v961_v8 }
 0x523   :  { %v909_v15 = vpop.f32.mrf.mxu0 }
 0x52a   :  { %v914_v19 = vpop.f32.mrf.mxu2 }
 0x52b   :  { %v1021_v16 = vpop.f32.mrf.mxu1  ;;  %v911_v49 = vpop.f32.mrf.mxu0 }
 0x532   :  { %v916_v26 = vpop.f32.mrf.mxu2 }
 0x533   :  { %v1023_v61 = vpop.f32.mrf.mxu1 }
 0x538   :  { %v830_v37 = vpop.f32.mrf.mxu3 }
 0x539   :  { %v910_v23 = vadd.f32 %v909_v15, %v830_v37 }
 0x53b   :  { %v1798_v24 = vadd.f32 %v1021_v16, %v910_v23 }
 0x540   :  { %v832_v13 = vpop.f32.mrf.mxu3 }
 0x541   :  { %v912_v20 = vadd.f32 %v911_v49, %v832_v13  ;;  %v1035_v49 = vld [vmem:[%s1841_s5] sm:$0x1]  ;;  %s1563_s5 = smov [#allocation10]  }
 0x543   :  { %v1796_v56 = vadd.f32 %v1023_v61, %v912_v20  ;;  %v1036_v61 = vld [vmem:[%s1842_s6] sm:$0x1]  ;;  %s1138_s6 = sshll.u32 %s1563_s5, 4  ;;  %s1139_s6 = int_to_ptr.vmem [resolvable:$true] %s1138_s6 }
 0x545   :  { %v1037_v27 = vadd.f32 %v1796_v56, %v1798_v24 }
 0x548   :  { %v835_v51 = vpop.f32.mrf.mxu3 }
 0x549   :  { %v915_v22 = vadd.f32 %v914_v19, %v835_v51 }
 0x550   :  { %v837_v17 = vpop.f32.mrf.mxu3 }
 0x551   :  { %v917_v62 = vadd.f32 %v916_v26, %v837_v17 }
 0x558   :  { %v1026_v21 = vpop.f32.mrf.mxu3 }
 0x559   :  { %v1800_v25 = vadd.f32 %v1026_v21, %v915_v22 }
 0x55b   :  { %v1038_v28 = vadd.f32 %v1037_v27, %v1800_v25 }
 0x560   :  { %v1028_v35 = vpop.f32.mrf.mxu3 }
 0x561   :  { %v1805_v29 = vadd.f32 %v1028_v35, %v917_v62 }
 0x563   :  { %v1039_v30 = vadd.f32 %v1038_v28, %v1805_v29 }
 0x565   :  { %v1040_v31 = vrot.slane %v1039_v30, 4 }
 0x567   :  { %v1041_v32 = vadd.f32 %v1040_v31, %v1039_v30 }
 0x569   :  { %v1042_v33 = vrot.slane %v1041_v32, 2 }
 0x56b   :  { %v1043_v34 = vadd.f32 %v1042_v33, %v1041_v32 }
 0x56d   :  { %v1044_v36 = vrot.slane %v1043_v34, 1 }
 0x56f   :  { %v1045_v44 = vadd.f32 %v1044_v36, %v1043_v34 }
 0x571   :  { %1046 = vrot.lane.b32.xlu2 %v1045_v44, %s1559_s1 }
 0x5cb   :  { %v1047_v38 = vpop.permute.xlu2 %1046 }
 0x5cc   :  { %v1048_v39 = vadd.f32 %v1047_v38, %v1045_v44 }
 0x5ce   :  { %1049 = vrot.lane.b32.xlu0 %v1048_v39, %s1561_s4 }
 0x640   :  { %v1050_v2 = vpop.permute.xlu0 %1049 }
 0x641   :  { %v1051_v41 = vadd.f32 %v1050_v2, %v1048_v39 }
 0x643   :  { %1052 = vrot.lane.b32.xlu1 %v1051_v41, %s1562_s18 }
 0x6b5   :  { %v1053_v42 = vpop.permute.xlu1 %1052 }
 0x6b6   :  { %v1054_v45 = vadd.f32 %v1053_v42, %v1051_v41  ;;  %v1448_v41 = vld [vmem:[#allocation4] sm:$0xff] }
 0x6b8   :  { %1055 = vrot.lane.b32.xlu2 %v1054_v45, %s1555_s9 }
 0x712   :  { %v1056_v10 = vpop.permute.xlu2 %1055 }
 0x713   :  { %v1057_v46 = vadd.f32 %v1056_v10, %v1054_v45  ;;  %v1449_v45 = vld [vmem:[#allocation4 + $0x8] sm:$0xff] }
 0x715   :  { %v1058_v48 = vmul.f32 0.001953125, %v1057_v46 }
 0x717   :  { %v1059_v50 = vperm.slane %v1058_v48, 0 }
 0x719   :  { %v1060_v52 = vsub.f32 %v1798_v24, %v1059_v50  ;;  %v1061_v53 = vsub.f32 %v1796_v56, %v1059_v50  ;;  %v1062_v54 = vsub.f32 %v1800_v25, %v1059_v50  ;;  %v1063_v57 = vsub.f32 %v1805_v29, %v1059_v50 }
 0x71b   :  { %v1064_v55 = vmul.f32 %v1060_v52, %v1060_v52  ;;  %v1065_v14 = vmul.f32 %v1061_v53, %v1061_v53  ;;  %v1066_v58 = vmul.f32 %v1062_v54, %v1062_v54  ;;  %v1067_v59 = vmul.f32 %v1063_v57, %v1063_v57 }
 0x71d   :  { %v1068_v43 = vadd.f32 %v1065_v14, %v1064_v55 }
 0x71f   :  { %v1069_v60 = vadd.f32 %v1068_v43, %v1066_v58 }
 0x721   :  { %v1070_v63 = vadd.f32 %v1069_v60, %v1067_v59 }
 0x723   :  { %v1071_v0 = vrot.slane %v1070_v63, 4 }
 0x725   :  { %v1072_v1 = vadd.f32 %v1071_v0, %v1070_v63 }
 0x727   :  { %v1073_v3 = vrot.slane %v1072_v1, 2 }
 0x729   :  { %v1074_v4 = vadd.f32 %v1073_v3, %v1072_v1 }
 0x72b   :  { %v1075_v18 = vrot.slane %v1074_v4, 1 }
 0x72d   :  { %v1076_v5 = vadd.f32 %v1075_v18, %v1074_v4 }
 0x72f   :  { %1077 = vrot.lane.b32.xlu0 %v1076_v5, %s1559_s1 }
 0x7a1   :  { %v1078_v47 = vpop.permute.xlu0 %1077 }
 0x7a2   :  { %v1079_v6 = vadd.f32 %v1078_v47, %v1076_v5 }
 0x7a4   :  { %1080 = vrot.lane.b32.xlu1 %v1079_v6, %s1561_s4 }
 0x816   :  { %v1081_v7 = vpop.permute.xlu1 %1080 }
 0x817   :  { %v1082_v9 = vadd.f32 %v1081_v7, %v1079_v6 }
 0x819   :  { %1083 = vrot.lane.b32.xlu2 %v1082_v9, %s1562_s18 }
 0x873   :  { %v1084_v40 = vpop.permute.xlu2 %1083 }
 0x874   :  { %v1085_v11 = vadd.f32 %v1084_v40, %v1082_v9 }
 0x876   :  { %1086 = vrot.lane.b32.xlu0 %v1085_v11, %s1555_s9 }
 0x8e8   :  { %v1087_v12 = vpop.permute.xlu0 %1086 }
 0x8e9   :  { %v1088_v8 = vadd.f32 %v1087_v12, %v1085_v11 }
 0x8eb   :  { %v1089_v37 = vmul.f32 0.001953125, %v1088_v8 }
 0x8ed   :  { %v1090_v13 = vadd.f32 1e-05, %v1089_v37 }
 0x8ef   :  { %1446 = vrsqrt.f32 %v1090_v13  ;;  %vm1097_vm3 = vweird.f32 %v1090_v13 }
 0x8f5   :  { %v1447_v51 = vpop.eup %1446 }
 0x8f6   :  { %v1092_v15 = vmul.f32 %v1447_v51, %v1090_v13  ;;  %vm1098_vm2 = vweird.f32 %v1447_v51 }
 0x8f7   :  { %vm1099_vm4 = vmor %vm1097_vm3, %vm1098_vm2 }
 0x8f8   :  { %v1093_v16 = vmul.f32 %v1447_v51, %v1092_v15 }
 0x8fa   :  { %v1094_v17 = vmul.f32 0.5, %v1093_v16 }
 0x8fc   :  { %v1095_v19 = vsub.f32 1.5, %v1094_v17 }
 0x8fe   :  { %v1096_v20 = vmul.f32 %v1447_v51, %v1095_v19 }
 0x900   :  { %v1100_v21 = vsel %vm1099_vm4, %v1447_v51, %v1096_v20 }
 0x901   :  { %v1101_v23 = vmul.f32 %v1100_v21, %v1035_v49 }
 0x903   :  { %v1102_v22 = vmul.f32 %v1101_v23, %v1058_v48  ;;  %v1105_v26 = vperm.slane %v1101_v23, 0  ;;  %v1451_v48 = vld [vmem:[#allocation4 + $0x18] sm:$0xff] }
 0x905   :  { %v1103_v62 = vsub.f32 %v1036_v61, %v1102_v22  ;;  %v1107_v27 = vmul.f32 %v1105_v26, %v1798_v24  ;;  %v1108_v28 = vmul.f32 %v1105_v26, %v1796_v56  ;;  %v1109_v30 = vmul.f32 %v1105_v26, %v1800_v25  ;;  %v1450_v24 = vld [vmem:[#allocation4 + $0x10] sm:$0xff] }
 0x906   :  { %v1110_v31 = vmul.f32 %v1105_v26, %v1805_v29 }
 0x907   :  { %v1112_v35 = vperm.slane %v1103_v62, 0 }
 0x909   :  { %v1114_v32 = vadd.f32 %v1112_v35, %v1107_v27  ;;  %v1115_v33 = vadd.f32 %v1112_v35, %v1108_v28  ;;  %v1116_v34 = vadd.f32 %v1112_v35, %v1109_v30  ;;  %v1117_v36 = vadd.f32 %v1112_v35, %v1110_v31 }
 0x90b   :  { %v1118_v44 = vmax.f32 %v1114_v32, 0.0  ;;  %v1119_v38 = vmax.f32 %v1115_v33, 0.0  ;;  %v1120_v39 = vmax.f32 %v1116_v34, 0.0  ;;  %v1121_v2 = vmax.f32 %v1117_v36, 0.0 }
 0x90d   :  { %v1122_v42 = vadd.f32 %v1448_v41, %v1118_v44  ;;  %v1123_v10 = vadd.f32 %v1449_v45, %v1119_v38  ;;  %v1124_v46 = vadd.f32 %v1450_v24, %v1120_v39  ;;  %v1125_v56 = vadd.f32 %v1451_v48, %v1121_v2 }
 0x90f   :  { %v1126_v50 = vmax.f32 %v1122_v42, 0.0  ;;  %v1127_v25 = vmax.f32 %v1123_v10, 0.0  ;;  %v1128_v52 = vmax.f32 %v1124_v46, 0.0  ;;  %v1129_v29 = vmax.f32 %v1125_v56, 0.0 }
 0x911   :  { %1130 = vst [vmem:[#allocation10] sm:$0xff] %v1126_v50 }
 0x912   :  { %1131 = vst [vmem:[#allocation10 + $0x8] sm:$0xff] %v1127_v25 }
 0x913   :  { %1132 = vst [vmem:[#allocation10 + $0x10] sm:$0xff] %v1128_v52 }
 0x914   :  { %1133 = vst [vmem:[#allocation10 + $0x18] sm:$0xff] %v1129_v29 }
 0x915   :  { %1146 = dma.vmem_to_hbm [thread:$0]  %s1139_s6, 512, %s1141_s27, [#allocation6], %s1558_s13, %s1558_s13, %s1559_s1  }
 0x916   :  { %1552 = dma.done.wait [#allocation6], 512  }
 0x917   :  { %1553 = vsyncadd [#allocation6], 4294966784 }
 0x918   :  { %1151 = vsyncpa [#allocation5], 1 }
 0x919   :  { %1152 = vsyncpa [#allocation8], 1 }
 0x91a   :  { %1153 = vsyncpa [#allocation6], 1 }

</bundles_post_ra>
